<compile_context>
chip_gen: v6e
topology: v6e:2x2x1
jax: 0.10.0
libtpu: 0.0.40
codegen_flags: <defaults>
</compile_context>

<pallas_src>
import functools

import jax
import jax.numpy as jnp
from jax import lax
from jax.experimental import pallas as pl
from jax.experimental.pallas import tpu as pltpu

BN_EPS = 1e-5
VMEM_LIMIT_BYTES = 48 * 1024 * 1024   # v7x-safe; v5e/v6e could go higher.


def conv_stats_kernel(x_ref, halo_ref, w_ref, mask_ref, y_ref, stats_ref,
                      win_ref, xk_ref, *, tap_offsets, qt):
    """One (Cout, QT) conv tile + per-tile partial batch stats.

    x_ref:     (Cin, QT)          body of the flat padded image for this tile (bf16)
    halo_ref:  (Cin, HALO)        next HALO flat columns (window overlap)       (bf16)
    w_ref:     (Cout, KH*KW*Cin)  tap-packed conv weight (bf16, grid-invariant)
    mask_ref:  (1, QT)            1.0 where the flat position is a valid output col
    y_ref:     (Cout, QT)         conv output tile (bf16), lane-dense (QT % 128 == 0)
    stats_ref: (Cout, 2)          col 0 = sum(y*mask), col 1 = sum(y^2*mask)   (f32)
    win_ref:   (Cin, QT+HALO)     VMEM scratch: halo-extended window
    xk_ref:    (KH*KW*Cin, QT)    VMEM scratch: tap-packed MXU operand
    """
    cin = x_ref.shape[0]

    # Halo-extended window; both stores have 128-aligned lane starts.
    win_ref[:, :qt] = x_ref[...]
    win_ref[:, qt:] = halo_ref[...]

    # Pack all KH*KW taps along the contraction dim (K = KH*KW*Cin): tap t is a
    # static-offset slice of the same window (unaligned accesses are loads only).
    for t, off in enumerate(tap_offsets):
        xk_ref[t * cin:(t + 1) * cin, :] = win_ref[:, pl.ds(off, qt)]

    # Single MXU matmul with f32 accumulation -- no per-tap accumulator
    # round-trips or VPU adds.
    acc = jnp.dot(w_ref[...], xk_ref[...], preferred_element_type=jnp.float32)
    y_ref[...] = acc.astype(y_ref.dtype)

    # Partial batch statistics from the f32 accumulator (before the bf16 cast),
    # with wrap-around / padded-tail columns masked out.
    m = mask_ref[...]                            # (1, qt) f32
    ym = acc * m
    stats_ref[:, 0:1] = jnp.sum(ym, axis=1, keepdims=True)
    stats_ref[:, 1:2] = jnp.sum(ym * acc, axis=1, keepdims=True)


def bn_relu_kernel(y_ref, scale_ref, shift_ref, o_ref):
    """y * scale + shift -> ReLU (BN affine precomputed in the wrapper)."""
    y = y_ref[...].astype(jnp.float32)           # elementwise math in f32 (v5e-safe)
    o_ref[...] = jnp.maximum(y * scale_ref[...] + shift_ref[...],
                             0.0).astype(o_ref.dtype)


def _round_up(x, m):
    return (x + m - 1) // m * m


def conv_bn_relu(x_nchw, weight, gamma, beta, *, padding=1, q_tile_max=2048,
                 out_dtype=jnp.bfloat16):
    """Conv2d(stride=1, no bias) -> BatchNorm2d (batch stats) -> ReLU.

    weight is PyTorch Conv2d layout (Cout, Cin, KH, KW).
    """
    N, Cin, H, W = x_nchw.shape
    Cout, _, KH, KW = weight.shape

    Hp, Wp = H + 2 * padding, W + 2 * padding
    Ho, Wo = Hp - KH + 1, Wp - KW + 1
    Q = Ho * Wp                        # flat output positions (incl. Wp-Wo wrap cols)
    HALO = (KH - 1) * Wp + (KW - 1)    # largest tap offset

    # Lane-dense spatial tiles: QT % 128 == 0, <= q_tile_max, and >= 2 tiles when
    # possible so both grid axes give pipelining / megacore steps even at N<=2.
    n_qt = max(1, pl.cdiv(Q, q_tile_max))
    if Q > 128:
        n_qt = max(n_qt, 2)
    QT = _round_up(pl.cdiv(Q, n_qt), 128)
    n_qt = pl.cdiv(Q, QT)
    Q_pad = n_qt * QT

    # Single fused pad: SAME spatial padding plus enough extra zero rows so the
    # last tile's halo stays in bounds.  x stays NCHW / channels-first.
    extra_rows = pl.cdiv(max(Q_pad + HALO - Hp * Wp, 0), Wp)
    xb = x_nchw.astype(jnp.bfloat16)
    xp = jnp.pad(xb, ((0, 0), (0, 0),
                      (padding, padding + extra_rows),
                      (padding, padding)))
    Pext = (Hp + extra_rows) * Wp
    xf = xp.reshape(N, Cin, Pext)

    # Tiny per-tile halo side-array (the QT-wide windows overlap by HALO cols).
    halo = jnp.stack(
        [xf[:, :, (j + 1) * QT:(j + 1) * QT + HALO] for j in range(n_qt)],
        axis=1)                                    # (N, n_qt, Cin, HALO)

    # Tap-packed weight: contraction index ordered (dh, dw, cin).
    K9 = KH * KW * Cin
    w_packed = jnp.transpose(weight, (0, 2, 3, 1)).reshape(Cout, K9)
    w_packed = w_packed.astype(jnp.bfloat16)

    # Valid-column mask (flat col % Wp < Wo, and < Q for the padded tail).
    q_idx = jnp.arange(Q_pad, dtype=jnp.int32)
    mask = (jnp.logical_and(q_idx % Wp < Wo, q_idx < Q)
            .astype(jnp.float32).reshape(1, Q_pad))

    tap_offsets = tuple(dh * Wp + dw for dh in range(KH) for dw in range(KW))

    # ---- Pass 1: conv (one packed-K matmul per tile) + partial batch stats.
    y, stats = pl.pallas_call(
        functools.partial(conv_stats_kernel, tap_offsets=tap_offsets, qt=QT),
        out_shape=(jax.ShapeDtypeStruct((N, Cout, Q_pad), jnp.bfloat16),
                   jax.ShapeDtypeStruct((N, n_qt, Cout, 2), jnp.float32)),
        grid=(N, n_qt),
        in_specs=[
            pl.BlockSpec((None, Cin, QT), lambda n, j: (n, 0, j)),
            pl.BlockSpec((None, None, Cin, HALO), lambda n, j: (n, j, 0, 0)),
            pl.BlockSpec((Cout, K9), lambda n, j: (0, 0)),
            pl.BlockSpec((1, QT), lambda n, j: (0, j)),
        ],
        out_specs=(
            pl.BlockSpec((None, Cout, QT), lambda n, j: (n, 0, j)),
            pl.BlockSpec((None, None, Cout, 2), lambda n, j: (n, j, 0, 0)),
        ),
        scratch_shapes=[
            pltpu.VMEM((Cin, QT + HALO), jnp.bfloat16),
            pltpu.VMEM((K9, QT), jnp.bfloat16),
        ],
        compiler_params=pltpu.CompilerParams(
            dimension_semantics=("parallel", "parallel"),
            vmem_limit_bytes=VMEM_LIMIT_BYTES),
    )(xf, halo, w_packed, mask)

    # ---- Tiny reduction + BN affine precompute in plain JAX (2 x Cout values).
    count = jnp.float32(N * Ho * Wo)
    tot = jnp.sum(stats, axis=(0, 1))              # (Cout, 2)
    mean = tot[:, 0] / count
    # Biased (1/N) variance == PyTorch training-mode normalization (do NOT
    # "fix" to unbiased).  Single-pass E[y^2]-mean^2 from the f32 accumulator;
    # fine for unit-scale activations, a shifted/Welford accumulation would be
    # safer for inputs with a huge DC offset.
    var = tot[:, 1] / count - mean * mean
    scale = gamma.astype(jnp.float32) * lax.rsqrt(var + BN_EPS)
    shift = beta.astype(jnp.float32) - mean * scale
    scale2 = scale.reshape(Cout, 1)
    shift2 = shift.reshape(Cout, 1)

    # ---- Pass 2: lane-dense elementwise BN-affine + ReLU, bf16 output.
    # (Stats come from the f32 accumulator while y was rounded to bf16; the
    # mismatch is far below the bf16 noise floor.)
    out_flat = pl.pallas_call(
        bn_relu_kernel,
        out_shape=jax.ShapeDtypeStruct((N, Cout, Q_pad), out_dtype),
        grid=(N, n_qt),
        in_specs=[
            pl.BlockSpec((None, Cout, QT), lambda n, j: (n, 0, j)),
            pl.BlockSpec((Cout, 1), lambda n, j: (0, 0)),
            pl.BlockSpec((Cout, 1), lambda n, j: (0, 0)),
        ],
        out_specs=pl.BlockSpec((None, Cout, QT), lambda n, j: (n, 0, j)),
        compiler_params=pltpu.CompilerParams(
            dimension_semantics=("parallel", "parallel"),
            vmem_limit_bytes=VMEM_LIMIT_BYTES),
    )(y, scale2, shift2)

    # Already NCHW: split the flat axis back into (Ho, Wp) and crop the wrap
    # columns.  Kept as one fused XLA slice because Wo < 128 here would force
    # masked vst stores if folded into pass 2.
    # TODO(synk): fold the crop into the pass-2 out_spec when Wo >= 128.
    out = out_flat[:, :, :Q].reshape(N, Cout, Ho, Wp)[:, :, :, :Wo]
    return out


def reference(x_nchw, weight, gamma, beta):
    """Pure-JAX f32 reference matching the PyTorch forward (training-mode BN)."""
    y = lax.conv_general_dilated(
        x_nchw.astype(jnp.float32), weight.astype(jnp.float32),
        window_strides=(1, 1), padding=((1, 1), (1, 1)),
        dimension_numbers=("NCHW", "OIHW", "NCHW"))
    mean = jnp.mean(y, axis=(0, 2, 3), keepdims=True)
    var = jnp.mean((y - mean) ** 2, axis=(0, 2, 3), keepdims=True)
    yhat = (y - mean) * lax.rsqrt(var + BN_EPS)
    g = gamma.reshape(1, -1, 1, 1)
    b = beta.reshape(1, -1, 1, 1)
    return jnp.maximum(yhat * g + b, 0.0)


if __name__ == "__main__":
    key = jax.random.PRNGKey(0)
    kx, kw = jax.random.split(key)

    N, Cin, H, W = 2, 4, 16, 16
    Cout, KH, KW = 8, 3, 3

    x = jax.random.normal(kx, (N, Cin, H, W), dtype=jnp.float32)

    # Conv2d weight: kaiming_normal_(a=1) => std = 1/sqrt(fan_in).
    fan_in = Cin * KH * KW
    weight = jax.random.normal(kw, (Cout, Cin, KH, KW), dtype=jnp.float32) / jnp.sqrt(
        jnp.float32(fan_in))

    # BatchNorm2d defaults: weight=1, bias=0 (running stats unused in train mode).
    gamma = jnp.ones((Cout,), jnp.float32)
    beta = jnp.zeros((Cout,), jnp.float32)

    fwd = jax.jit(conv_bn_relu)
    out = jax.block_until_ready(fwd(x, weight, gamma, beta))

    ref = reference(x, weight, gamma, beta)
    assert out.shape == (N, Cout, H, W), out.shape
    err = float(jnp.max(jnp.abs(out.astype(jnp.float32) - ref)))
    # bf16 conv inputs / bf16 y / bf16 output (f32 accumulation, f32 BN stats)
    # vs the f32 reference: expected deviation ~1e-2 in normalized units.
    assert jnp.allclose(out.astype(jnp.float32), ref, atol=5e-2, rtol=5e-2), err

    print("KERNEL_OK")
</pallas_src>

<mosaic_0001>
module attributes {stable_mosaic.version = 11 : i64} {
  func.func @conv_stats_kernel(%arg0: i32, %arg1: i32, %arg2: memref<1x4x256xbf16, #tpu.memory_space<vmem>>, %arg3: memref<1x1x4x38xbf16, #tpu.memory_space<vmem>>, %arg4: memref<8x36xbf16, #tpu.memory_space<vmem>>, %arg5: memref<1x256xf32, #tpu.memory_space<vmem>>, %arg6: memref<1x8x256xbf16, #tpu.memory_space<vmem>>, %arg7: memref<1x1x8x2xf32, #tpu.memory_space<vmem>>, %arg8: memref<4x294xbf16, #tpu.memory_space<vmem>>, %arg9: memref<36x256xbf16, #tpu.memory_space<vmem>>) attributes {dimension_semantics = [#tpu.dimension_semantics<parallel>, #tpu.dimension_semantics<parallel>], iteration_bounds = array<i64: 2, 2>, scalar_prefetch = 0 : i64, scratch_operands = 2 : i64, tpu.core_type = #tpu.core_type<tc>, window_params = [{transform_indices = @transform_0, window_bounds = array<i64: 1, 4, 256>}, {transform_indices = @transform_1, window_bounds = array<i64: 1, 1, 4, 38>}, {pipeline_mode = #tpu.pipeline_mode<synchronous>, transform_indices = @transform_2, window_bounds = array<i64: 8, 36>}, {transform_indices = @transform_3, window_bounds = array<i64: 1, 256>}, {transform_indices = @transform_4, window_bounds = array<i64: 1, 8, 256>}, {transform_indices = @transform_5, window_bounds = array<i64: 1, 1, 8, 2>}]} {
    %c0 = arith.constant 0 : index
    %c0_0 = arith.constant 0 : index
    %c0_1 = arith.constant 0 : index
    %0 = vector.load %arg2[%c0, %c0_0, %c0_1] : memref<1x4x256xbf16, #tpu.memory_space<vmem>>, vector<1x4x256xbf16>
    %1 = vector.shape_cast %0 : vector<1x4x256xbf16> to vector<4x256xbf16>
    %c0_2 = arith.constant 0 : index
    %c0_3 = arith.constant 0 : index
    %2 = vector.load %arg8[%c0_2, %c0_3] : memref<4x294xbf16, #tpu.memory_space<vmem>>, vector<4x256xbf16>
    tpu.vector_store %arg8[%c0_2, %c0_3], %1 {strides = array<i32>} : memref<4x294xbf16, #tpu.memory_space<vmem>>, vector<4x256xbf16>,
    %c0_4 = arith.constant 0 : index
    %c0_5 = arith.constant 0 : index
    %c0_6 = arith.constant 0 : index
    %c0_7 = arith.constant 0 : index
    %3 = vector.load %arg3[%c0_4, %c0_5, %c0_6, %c0_7] : memref<1x1x4x38xbf16, #tpu.memory_space<vmem>>, vector<1x1x4x38xbf16>
    %4 = vector.shape_cast %3 : vector<1x1x4x38xbf16> to vector<4x38xbf16>
    %c0_8 = arith.constant 0 : index
    %c256 = arith.constant 256 : index
    %5 = vector.load %arg8[%c0_8, %c256] : memref<4x294xbf16, #tpu.memory_space<vmem>>, vector<4x38xbf16>
    tpu.vector_store %arg8[%c0_8, %c256], %4 {strides = array<i32>} : memref<4x294xbf16, #tpu.memory_space<vmem>>, vector<4x38xbf16>,
    %c0_9 = arith.constant 0 : index
    %c0_10 = arith.constant 0 : index
    %6 = vector.load %arg8[%c0_9, %c0_10] : memref<4x294xbf16, #tpu.memory_space<vmem>>, vector<4x256xbf16>
    %c0_11 = arith.constant 0 : index
    %c0_12 = arith.constant 0 : index
    %7 = vector.load %arg9[%c0_11, %c0_12] : memref<36x256xbf16, #tpu.memory_space<vmem>>, vector<4x256xbf16>
    tpu.vector_store %arg9[%c0_11, %c0_12], %6 {strides = array<i32>} : memref<36x256xbf16, #tpu.memory_space<vmem>>, vector<4x256xbf16>,
    %c0_13 = arith.constant 0 : index
    %c1 = arith.constant 1 : index
    %8 = vector.load %arg8[%c0_13, %c1] : memref<4x294xbf16, #tpu.memory_space<vmem>>, vector<4x256xbf16>
    %c4 = arith.constant 4 : index
    %c0_14 = arith.constant 0 : index
    %9 = vector.load %arg9[%c4, %c0_14] : memref<36x256xbf16, #tpu.memory_space<vmem>>, vector<4x256xbf16>
    tpu.vector_store %arg9[%c4, %c0_14], %8 {strides = array<i32>} : memref<36x256xbf16, #tpu.memory_space<vmem>>, vector<4x256xbf16>,
    %c0_15 = arith.constant 0 : index
    %c2 = arith.constant 2 : index
    %10 = vector.load %arg8[%c0_15, %c2] : memref<4x294xbf16, #tpu.memory_space<vmem>>, vector<4x256xbf16>
    %c8 = arith.constant 8 : index
    %c0_16 = arith.constant 0 : index
    %11 = vector.load %arg9[%c8, %c0_16] : memref<36x256xbf16, #tpu.memory_space<vmem>>, vector<4x256xbf16>
    tpu.vector_store %arg9[%c8, %c0_16], %10 {strides = array<i32>} : memref<36x256xbf16, #tpu.memory_space<vmem>>, vector<4x256xbf16>,
    %c0_17 = arith.constant 0 : index
    %c18 = arith.constant 18 : index
    %12 = vector.load %arg8[%c0_17, %c18] : memref<4x294xbf16, #tpu.memory_space<vmem>>, vector<4x256xbf16>
    %c12 = arith.constant 12 : index
    %c0_18 = arith.constant 0 : index
    %13 = vector.load %arg9[%c12, %c0_18] : memref<36x256xbf16, #tpu.memory_space<vmem>>, vector<4x256xbf16>
    tpu.vector_store %arg9[%c12, %c0_18], %12 {strides = array<i32>} : memref<36x256xbf16, #tpu.memory_space<vmem>>, vector<4x256xbf16>,
    %c0_19 = arith.constant 0 : index
    %c19 = arith.constant 19 : index
    %14 = vector.load %arg8[%c0_19, %c19] : memref<4x294xbf16, #tpu.memory_space<vmem>>, vector<4x256xbf16>
    %c16 = arith.constant 16 : index
    %c0_20 = arith.constant 0 : index
    %15 = vector.load %arg9[%c16, %c0_20] : memref<36x256xbf16, #tpu.memory_space<vmem>>, vector<4x256xbf16>
    tpu.vector_store %arg9[%c16, %c0_20], %14 {strides = array<i32>} : memref<36x256xbf16, #tpu.memory_space<vmem>>, vector<4x256xbf16>,
    %c0_21 = arith.constant 0 : index
    %c20 = arith.constant 20 : index
    %16 = vector.load %arg8[%c0_21, %c20] : memref<4x294xbf16, #tpu.memory_space<vmem>>, vector<4x256xbf16>
    %c20_22 = arith.constant 20 : index
    %c0_23 = arith.constant 0 : index
    %17 = vector.load %arg9[%c20_22, %c0_23] : memref<36x256xbf16, #tpu.memory_space<vmem>>, vector<4x256xbf16>
    tpu.vector_store %arg9[%c20_22, %c0_23], %16 {strides = array<i32>} : memref<36x256xbf16, #tpu.memory_space<vmem>>, vector<4x256xbf16>,
    %c0_24 = arith.constant 0 : index
    %c36 = arith.constant 36 : index
    %18 = vector.load %arg8[%c0_24, %c36] : memref<4x294xbf16, #tpu.memory_space<vmem>>, vector<4x256xbf16>
    %c24 = arith.constant 24 : index
    %c0_25 = arith.constant 0 : index
    %19 = vector.load %arg9[%c24, %c0_25] : memref<36x256xbf16, #tpu.memory_space<vmem>>, vector<4x256xbf16>
    tpu.vector_store %arg9[%c24, %c0_25], %18 {strides = array<i32>} : memref<36x256xbf16, #tpu.memory_space<vmem>>, vector<4x256xbf16>,
    %c0_26 = arith.constant 0 : index
    %c37 = arith.constant 37 : index
    %20 = vector.load %arg8[%c0_26, %c37] : memref<4x294xbf16, #tpu.memory_space<vmem>>, vector<4x256xbf16>
    %c28 = arith.constant 28 : index
    %c0_27 = arith.constant 0 : index
    %21 = vector.load %arg9[%c28, %c0_27] : memref<36x256xbf16, #tpu.memory_space<vmem>>, vector<4x256xbf16>
    tpu.vector_store %arg9[%c28, %c0_27], %20 {strides = array<i32>} : memref<36x256xbf16, #tpu.memory_space<vmem>>, vector<4x256xbf16>,
    %c0_28 = arith.constant 0 : index
    %c38 = arith.constant 38 : index
    %22 = vector.load %arg8[%c0_28, %c38] : memref<4x294xbf16, #tpu.memory_space<vmem>>, vector<4x256xbf16>
    %c32 = arith.constant 32 : index
    %c0_29 = arith.constant 0 : index
    %23 = vector.load %arg9[%c32, %c0_29] : memref<36x256xbf16, #tpu.memory_space<vmem>>, vector<4x256xbf16>
    tpu.vector_store %arg9[%c32, %c0_29], %22 {strides = array<i32>} : memref<36x256xbf16, #tpu.memory_space<vmem>>, vector<4x256xbf16>,
    %c0_30 = arith.constant 0 : index
    %c0_31 = arith.constant 0 : index
    %24 = vector.load %arg4[%c0_30, %c0_31] : memref<8x36xbf16, #tpu.memory_space<vmem>>, vector<8x36xbf16>
    %c0_32 = arith.constant 0 : index
    %c0_33 = arith.constant 0 : index
    %25 = vector.load %arg9[%c0_32, %c0_33] : memref<36x256xbf16, #tpu.memory_space<vmem>>, vector<36x256xbf16>
    %cst = arith.constant dense<0.000000e+00> : vector<8x256xf32>
    %26 = tpu.matmul %24, %25, %cst {dimension_numbers = #tpu.dot_dimension_numbers<[1], [0], [0], [1], [0, 0, 1, 1], [], []>} : vector<8x36xbf16>, vector<36x256xbf16>, vector<8x256xf32> -> vector<8x256xf32>
    %27 = arith.truncf %26 : vector<8x256xf32> to vector<8x256xbf16>
    %c0_34 = arith.constant 0 : index
    %c0_35 = arith.constant 0 : index
    %c0_36 = arith.constant 0 : index
    %28 = vector.load %arg6[%c0_34, %c0_35, %c0_36] : memref<1x8x256xbf16, #tpu.memory_space<vmem>>, vector<1x8x256xbf16>
    %29 = vector.shape_cast %28 : vector<1x8x256xbf16> to vector<8x256xbf16>
    %30 = vector.shape_cast %27 : vector<8x256xbf16> to vector<1x8x256xbf16>
    tpu.vector_store %arg6[%c0_34, %c0_35, %c0_36], %30 {strides = array<i32>} : memref<1x8x256xbf16, #tpu.memory_space<vmem>>, vector<1x8x256xbf16>,
    %c0_37 = arith.constant 0 : index
    %c0_38 = arith.constant 0 : index
    %31 = vector.load %arg5[%c0_37, %c0_38] : memref<1x256xf32, #tpu.memory_space<vmem>>, vector<1x256xf32>
    %32 = vector.broadcast %31 : vector<1x256xf32> to vector<8x256xf32>
    %33 = arith.mulf %26, %32 : vector<8x256xf32>
    %cst_39 = arith.constant dense<0.000000e+00> : vector<8xf32>
    %34 = vector.multi_reduction <add>, %33, %cst_39 [1] : vector<8x256xf32> to vector<8xf32>
    %35 = vector.shape_cast %34 : vector<8xf32> to vector<8x1xf32>
    %c0_40 = arith.constant 0 : index
    %c0_41 = arith.constant 0 : index
    %c0_42 = arith.constant 0 : index
    %c0_43 = arith.constant 0 : index
    %36 = vector.load %arg7[%c0_40, %c0_41, %c0_42, %c0_43] : memref<1x1x8x2xf32, #tpu.memory_space<vmem>>, vector<1x1x8x1xf32>
    %37 = vector.shape_cast %36 : vector<1x1x8x1xf32> to vector<8x1xf32>
    %38 = vector.shape_cast %35 : vector<8x1xf32> to vector<1x1x8x1xf32>
    tpu.vector_store %arg7[%c0_40, %c0_41, %c0_42, %c0_43], %38 {strides = array<i32>} : memref<1x1x8x2xf32, #tpu.memory_space<vmem>>, vector<1x1x8x1xf32>,
    %39 = arith.mulf %33, %26 : vector<8x256xf32>
    %cst_44 = arith.constant dense<0.000000e+00> : vector<8xf32>
    %40 = vector.multi_reduction <add>, %39, %cst_44 [1] : vector<8x256xf32> to vector<8xf32>
    %41 = vector.shape_cast %40 : vector<8xf32> to vector<8x1xf32>
    %c0_45 = arith.constant 0 : index
    %c0_46 = arith.constant 0 : index
    %c0_47 = arith.constant 0 : index
    %c1_48 = arith.constant 1 : index
    %42 = vector.load %arg7[%c0_45, %c0_46, %c0_47, %c1_48] : memref<1x1x8x2xf32, #tpu.memory_space<vmem>>, vector<1x1x8x1xf32>
    %43 = vector.shape_cast %42 : vector<1x1x8x1xf32> to vector<8x1xf32>
    %44 = vector.shape_cast %41 : vector<8x1xf32> to vector<1x1x8x1xf32>
    tpu.vector_store %arg7[%c0_45, %c0_46, %c0_47, %c1_48], %44 {strides = array<i32>} : memref<1x1x8x2xf32, #tpu.memory_space<vmem>>, vector<1x1x8x1xf32>,
    return
  }
  func.func @transform_0(%arg0: i32, %arg1: i32) -> (i32, i32, i32) {
    %c0_i32 = arith.constant 0 : i32
    %c0_i32_0 = arith.constant 0 : i32
    return %arg0, %c0_i32, %arg1 : i32, i32, i32
  }
  func.func @transform_1(%arg0: i32, %arg1: i32) -> (i32, i32, i32, i32) {
    %c0_i32 = arith.constant 0 : i32
    %c0_i32_0 = arith.constant 0 : i32
    %c0_i32_1 = arith.constant 0 : i32
    return %arg0, %arg1, %c0_i32, %c0_i32_0 : i32, i32, i32, i32
  }
  func.func @transform_2(%arg0: i32, %arg1: i32) -> (i32, i32) {
    %c0_i32 = arith.constant 0 : i32
    %c0_i32_0 = arith.constant 0 : i32
    %c0_i32_1 = arith.constant 0 : i32
    return %c0_i32, %c0_i32_0 : i32, i32
  }
  func.func @transform_3(%arg0: i32, %arg1: i32) -> (i32, i32) {
    %c0_i32 = arith.constant 0 : i32
    %c0_i32_0 = arith.constant 0 : i32
    return %c0_i32, %arg1 : i32, i32
  }
  func.func @transform_4(%arg0: i32, %arg1: i32) -> (i32, i32, i32) {
    %c0_i32 = arith.constant 0 : i32
    %c0_i32_0 = arith.constant 0 : i32
    return %arg0, %c0_i32, %arg1 : i32, i32, i32
  }
  func.func @transform_5(%arg0: i32, %arg1: i32) -> (i32, i32, i32, i32) {
    %c0_i32 = arith.constant 0 : i32
    %c0_i32_0 = arith.constant 0 : i32
    %c0_i32_1 = arith.constant 0 : i32
    return %arg0, %arg1, %c0_i32, %c0_i32_0 : i32, i32, i32, i32
  }
}

module attributes {stable_mosaic.version = 11 : i64} {
  func.func @bn_relu_kernel(%arg0: i32, %arg1: i32, %arg2: memref<1x8x256xbf16, #tpu.memory_space<vmem>>, %arg3: memref<8x1xf32, #tpu.memory_space<vmem>>, %arg4: memref<8x1xf32, #tpu.memory_space<vmem>>, %arg5: memref<1x8x256xbf16, #tpu.memory_space<vmem>>) attributes {dimension_semantics = [#tpu.dimension_semantics<parallel>, #tpu.dimension_semantics<parallel>], iteration_bounds = array<i64: 2, 2>, scalar_prefetch = 0 : i64, scratch_operands = 0 : i64, tpu.core_type = #tpu.core_type<tc>, window_params = [{transform_indices = @transform_0, window_bounds = array<i64: 1, 8, 256>}, {pipeline_mode = #tpu.pipeline_mode<synchronous>, transform_indices = @transform_1, window_bounds = array<i64: 8, 1>}, {pipeline_mode = #tpu.pipeline_mode<synchronous>, transform_indices = @transform_2, window_bounds = array<i64: 8, 1>}, {transform_indices = @transform_3, window_bounds = array<i64: 1, 8, 256>}]} {
    %c0 = arith.constant 0 : index
    %c0_0 = arith.constant 0 : index
    %c0_1 = arith.constant 0 : index
    %0 = vector.load %arg2[%c0, %c0_0, %c0_1] : memref<1x8x256xbf16, #tpu.memory_space<vmem>>, vector<1x8x256xbf16>
    %1 = vector.shape_cast %0 : vector<1x8x256xbf16> to vector<8x256xbf16>
    %2 = arith.extf %1 : vector<8x256xbf16> to vector<8x256xf32>
    %c0_2 = arith.constant 0 : index
    %c0_3 = arith.constant 0 : index
    %3 = vector.load %arg3[%c0_2, %c0_3] : memref<8x1xf32, #tpu.memory_space<vmem>>, vector<8x1xf32>
    %4 = vector.broadcast %3 : vector<8x1xf32> to vector<8x256xf32>
    %5 = arith.mulf %2, %4 : vector<8x256xf32>
    %c0_4 = arith.constant 0 : index
    %c0_5 = arith.constant 0 : index
    %6 = vector.load %arg4[%c0_4, %c0_5] : memref<8x1xf32, #tpu.memory_space<vmem>>, vector<8x1xf32>
    %7 = vector.broadcast %6 : vector<8x1xf32> to vector<8x256xf32>
    %8 = arith.addf %5, %7 : vector<8x256xf32>
    %cst = arith.constant 0.000000e+00 : f32
    %9 = vector.broadcast %cst : f32 to vector<8x256xf32>
    %10 = arith.maximumf %8, %9 : vector<8x256xf32>
    %11 = arith.truncf %10 : vector<8x256xf32> to vector<8x256xbf16>
    %c0_6 = arith.constant 0 : index
    %c0_7 = arith.constant 0 : index
    %c0_8 = arith.constant 0 : index
    %12 = vector.load %arg5[%c0_6, %c0_7, %c0_8] : memref<1x8x256xbf16, #tpu.memory_space<vmem>>, vector<1x8x256xbf16>
    %13 = vector.shape_cast %12 : vector<1x8x256xbf16> to vector<8x256xbf16>
    %14 = vector.shape_cast %11 : vector<8x256xbf16> to vector<1x8x256xbf16>
    tpu.vector_store %arg5[%c0_6, %c0_7, %c0_8], %14 {strides = array<i32>} : memref<1x8x256xbf16, #tpu.memory_space<vmem>>, vector<1x8x256xbf16>,
    return
  }
  func.func @transform_0(%arg0: i32, %arg1: i32) -> (i32, i32, i32) {
    %c0_i32 = arith.constant 0 : i32
    %c0_i32_0 = arith.constant 0 : i32
    return %arg0, %c0_i32, %arg1 : i32, i32, i32
  }
  func.func @transform_1(%arg0: i32, %arg1: i32) -> (i32, i32) {
    %c0_i32 = arith.constant 0 : i32
    %c0_i32_0 = arith.constant 0 : i32
    %c0_i32_1 = arith.constant 0 : i32
    return %c0_i32, %c0_i32_0 : i32, i32
  }
  func.func @transform_2(%arg0: i32, %arg1: i32) -> (i32, i32) {
    %c0_i32 = arith.constant 0 : i32
    %c0_i32_0 = arith.constant 0 : i32
    %c0_i32_1 = arith.constant 0 : i32
    return %c0_i32, %c0_i32_0 : i32, i32
  }
  func.func @transform_3(%arg0: i32, %arg1: i32) -> (i32, i32, i32) {
    %c0_i32 = arith.constant 0 : i32
    %c0_i32_0 = arith.constant 0 : i32
    return %arg0, %c0_i32, %arg1 : i32, i32, i32
  }
}

</mosaic_0001>

<bundles_post_ra>
// kernel: conv_bn_relu.3
= control target key start
LH: loop header
LB: loop body
LE: loop exit
PB: predicated region body
PF: predicated region fallthrough
CT: control target
= control target key end

     0   :  { %s448_s12 = smov 0   ;;  %s450_s13 = smov 0   ;;  %s505_s0 = inlined_call_operand.vmem [shape: bf16[2,8,512], index: 0, kind: input, shape index: {}]   ;;  %s506_s1 = inlined_call_operand.vmem [shape: f32[8,1], index: 1, kind: input, shape index: {}]   ;;  %s507_s2 = inlined_call_operand.vmem [shape: f32[8,1], index: 2, kind: input, shape index: {}]   ;;  %s508_s3 = inlined_call_operand.vmem [shape: bf16[2,8,512], index: 3, kind: output, shape index: {}]  }
   0x1   :  { %s452_s14 = smov 0   ;;  %s454_s15 = smov 0  }
   0x2   :  { %s456_s16 = smov 0  }
   0x3 LB: > { %s22_s17 = sadd.s32 1, %s417_s14  ;;  %s25_s18 = sadd.s32 1, %s421_s15  ;;  %s425_s16 = sphi %s456_s16, %s13_s16   ;;  %s421_s15 = sphi %s454_s15, %s512_s15   ;;  %s417_s14 = sphi %s452_s14, %s511_s14   ;;  %s413_s13 = sphi %s450_s13, %s510_s13   ;;  %s409_s12 = sphi %s448_s12, %s509_s12  }
   0x4   : > { %p23_p0 = scmp.ge.s32.totalorder %s22_s17, 2  ;;  %p334_p1 = scmp.ge.s32.totalorder %s425_s16, 1 }
   0x5   : > { %p158_p2 = scmp.lt.s32.totalorder %s425_s16, 5 }
   0x6   : > { %s514_s17 = smov (%p23_p0, %s22_s17), 0  ;;  %s516_s18 = smov (!%p23_p0, %s25_s18), %s421_s15 }
   0x7   : > { %p159_p3 = pnand %p334_p1, %p158_p2  ;;  %p27_p4 = scmp.ge.s32.totalorder %s516_s18, 2 }
   0x8   : > { %s335_s23 = sshll.u32 (!%p159_p3), %s409_s12, 1  ;;  %p191_p5 = scmp.lt.s32.totalorder (!%p159_p3), %s413_s13, 1 }
   0x9   : > { %s518_s18 = smov (%p27_p4, %s516_s18), 0  ;;  %162 = sbr.rel (%p159_p3) target bundleno = 151 (0x97), region = 32 }
   0xa   : > { %p193_p6 = scmp.lt.s32.totalorder (!%p159_p3), %s335_s23, 3 }
   0xe   : > { %v213_v0 = vld [vmem:[%s506_s1] sm:$0xff]  ;;  %v427_v1 = vmov 0   ;;  %s520_s13 = smov (!%p191_p5, %s413_s13), 1  ;;  %s522_s23 = smov (!%p193_p6, %s335_s23), 3 }
   0xf   : > { %386 = vset.pattern.permute.xlu0 %v427_v1  ;;  %v221_v2 = vld [vmem:[%s507_s2] sm:$0xff]  ;;  %s336_s24 = sshll.u32 %s520_s13, 2 }
  0x10   : > { %216 = vperm.xlu0 %386, %v213_v0   ;;  %s196_s25 = sadd.s32 %s336_s24, %s522_s23 }
  0x11   : > { %s337_s26 = sshll.u32 %s196_s25, 2 }
  0x12   : > { %s198_s29 = scalar_lea.vmem %s505_s0, %s337_s26  ;;  %s208_s5 = scalar_lea.vmem %s508_s3, %s337_s26 }
  0x13   : > { %v210_v3 = vld [vmem:[%s198_s29] sm:$0xff] }
  0x14   : > { %224 = vperm.xlu0 %386, %v221_v2   ;;  %v211_v4 = vunpack.c.l.bf16 %v210_v3  ;;  %v212_v5 = vunpack.c.h.bf16 %v210_v3 }
  0x8b   : > { %v217_v6 = vpop.permute.xlu0 %216 }
  0x8c   : > { %v219_v7 = vmul.f32 %v217_v6, %v211_v4  ;;  %v220_v8 = vmul.f32 %v217_v6, %v212_v5 }
  0x8f   : > { %v225_v9 = vpop.permute.xlu0 %224 }
  0x90   : > { %v227_v10 = vadd.f32 %v225_v9, %v219_v7  ;;  %v228_v11 = vadd.f32 %v225_v9, %v220_v8 }
  0x92   : > { %v229_v12 = vmax.f32 %v227_v10, 0.0  ;;  %v230_v13 = vmax.f32 %v228_v11, 0.0 }
  0x94   : > { %v344_v14 = vpack.c.bf16 %v230_v13, %v229_v12 }
  0x96   : > { %239 = vst [vmem:[%s208_s5] sm:$0xff] %v344_v14 }
  0x97 PF: > { %s13_s16 = sadd.s32 1, %s425_s16   ;;  %s509_s12 = smov %s417_s14 }
  0x98   : > { %p10_p7 = scmp.ge.s32.totalorder %s13_s16, 6   ;;  %s510_s13 = smov %s421_s15 }
  0x99   : > { %s511_s14 = smov %s514_s17  ;;  %s512_s15 = smov %s518_s18 }
  0x9a   :  { %12 = sbr.rel (!%p10_p7) target bundleno = 3 (0x3), region = 62 }

// kernel: conv_bn_relu.2
= control target key start
LH: loop header
LB: loop body
LE: loop exit
PB: predicated region body
PF: predicated region fallthrough
CT: control target
= control target key end

     0   :  { %s1054_s18 = smov 0   ;;  %s1056_s19 = smov 0   ;;  %s1154_s0 = inlined_call_operand.vmem [shape: bf16[2,4,558], index: 0, kind: input, shape index: {}]   ;;  %s1155_s1 = inlined_call_operand.vmem [shape: bf16[2,2,4,38], index: 1, kind: input, shape index: {}]   ;;  %s1156_s2 = inlined_call_operand.vmem [shape: bf16[8,36], index: 2, kind: input, shape index: {}]   ;;  %s1157_s3 = inlined_call_operand.vmem [shape: f32[1,512], index: 3, kind: input, shape index: {}]   ;;  %s1158_s4 = inlined_call_operand.vmem [shape: bf16[2,8,512], index: 4, kind: output, shape index: {0}]   ;;  %s1159_s5 = inlined_call_operand.vmem [shape: f32[2,2,8,2], index: 5, kind: output, shape index: {1}]  }
   0x1   :  { %s1058_s20 = smov 0   ;;  %s1060_s21 = smov 0  }
   0x2   :  { %s1062_s22 = smov 0  }
   0x3 LB: > { %s25_s23 = sadd.s32 1, %s1004_s20  ;;  %s28_s24 = sadd.s32 1, %s1008_s21  ;;  %s1012_s22 = sphi %s1062_s22, %s16_s22   ;;  %s1008_s21 = sphi %s1060_s21, %s1163_s21   ;;  %s1004_s20 = sphi %s1058_s20, %s1162_s20   ;;  %s1000_s19 = sphi %s1056_s19, %s1161_s19   ;;  %s996_s18 = sphi %s1054_s18, %s1160_s18  }
   0x4   : > { %p26_p0 = scmp.ge.s32.totalorder %s25_s23, 2  ;;  %p883_p1 = scmp.ge.s32.totalorder %s1012_s22, 1 }
   0x5   : > { %p246_p2 = scmp.lt.s32.totalorder %s1012_s22, 5 }
   0x6   : > { %s1165_s23 = smov (%p26_p0, %s25_s23), 0  ;;  %s1167_s24 = smov (!%p26_p0, %s28_s24), %s1008_s21 }
   0x7   : > { %p247_p3 = pnand %p883_p1, %p246_p2  ;;  %p30_p4 = scmp.ge.s32.totalorder %s1167_s24, 2 }
   0x8   : > { %s1084_s25 = sshll.u32 (!%p247_p3), %s996_s18, 1  ;;  %p311_p5 = scmp.lt.s32.totalorder (!%p247_p3), %s1000_s19, 1 }
   0x9   : > { %s1169_s24 = smov (%p30_p4, %s1167_s24), 0  ;;  %250 = sbr.rel (%p247_p3) target bundleno = 532 (0x214), region = 36 }
   0xa   : > { %p313_p6 = scmp.lt.s32.totalorder (!%p247_p3), %s1084_s25, 4  ;;  %p326_p7 = scmp.lt.s32.totalorder (!%p247_p3), %s996_s18, 1 }
   0xb   : > { %s1015_s14 = smov (!%p247_p3), 90   ;;  %s1016_s15 = smov (!%p247_p3), 109  }
   0xc   : > { %s1017_s16 = smov (!%p247_p3), 92   ;;  %s1018_s17 = smov (!%p247_p3), 108  }
   0xd   : > { %p333_p8 = scmp.lt.s32.totalorder (!%p247_p3), %s1084_s25, 3 }
   0xe   : > { %s1171_s19 = smov (!%p311_p5, %s1000_s19), 1  ;;  %s1173_s18 = smov (!%p326_p7, %s996_s18), 1  ;;  %v1014_v0 = vmov 1983009808   ;;  %v378_v2 = vlaneseq  ;;  %vm359_vm0 = vcmask 304128   ;;  %v1023_v41 = vmov 0  }
   0xf   : > { %s314_s26 = scalar_select %p313_p6, %s1084_s25, 4  ;;  %v376_v1 = vunpack.c.l.s4 %v1014_v0  ;;  %671 = vmatprep.mubr.bf16.mxu0 %v1023_v41  ;;  %vm395_vm1 = vcmask 1043456   ;;  %vm593_vm2 = vcmask 736256   ;;  %vm509_vm3 = vcmask 883712  }
  0x10   : > { %s907_s27 = smul.u32 5, %s1171_s19  ;;  %s886_s28 = sshll.u32 %s1171_s19, 1  ;;  %v1101_v6 = vshrl.u32 %v378_v2, 7  ;;  %vm565_vm4 = vcmask 744448   ;;  %vm481_vm5 = vcmask 891904   ;;  %vm537_vm6 = vcmask 752640  }
  0x11   : > { %s1092_s6 = sadd.s32 %s886_s28, %s1173_s18  ;;  %v377_v5 = vunpack.c.0.s8 %v376_v1  ;;  %s1019_s18 = smov 91   ;;  %vm397_vm7 = vcmask 1039360   ;;  %vm632_vm8 = vcmask 1041408   ;;  %vm425_vm9 = vcmask 1031168  }
  0x12   : > { %s316_s29 = sadd.s32 %s907_s27, %s314_s26  ;;  %s887_s10 = sshll.u32 %s1092_s6, 1  ;;  %vm453_vm10 = vcmask 900096   ;;  %vm628_vm11 = vcmask 293888   ;;  %vm706_vm12 = vcmask 7168   ;;  %vm713_vm13 = vcmask 15368  }
  0x13   : > { %s885_s30 = sshll.u32 %s316_s29, 1  ;;  %s331_s13 = scalar_lea.vmem %s1155_s1, %s887_s10  ;;  %v380_v7 = vsub.s32 %v377_v5, %v1101_v6 }
  0x14   : > { %s318_s9 = scalar_lea.vmem %s1154_s0, %s885_s30  ;;  %v358_v4 = vld [vmem:[%s331_s13] sm:$0x3]  ;;  %s1020_s26 = smov 127  }
  0x15   : > { %v356_v3 = vld [vmem:[%s318_s9] sm:$0xf]  ;;  %360 = vst.msk [vmem:[#allocation2 + $0x4] sm:$0x3] %vm359_vm0, %v358_v4  ;;  %s1021_s27 = smov 126   ;;  %s1022_s28 = smov 110  }
  0x16   : > { %357 = vst [vmem:[#allocation2] sm:$0xf] %v356_v3  ;;  %s1175_s25 = smov (!%p333_p8, %s1084_s25), 3  ;;  %s890_s10 = sshll.u32 %s1171_s19, 2 }
  0x17   : > { %s335_s9 = scalar_lea.vmem %s1157_s3, %s1175_s25  ;;  %s343_s11 = sadd.s32 %s890_s10, %s1175_s25 }
  0x18   : > { %s891_s12 = sshll.u32 %s343_s11, 2  ;;  %s893_s19 = sshll.u32 %s1092_s6, 3 }
  0x1d   : > { %v569_v8 = vld [vmem:[#allocation2] sm:$0x3f] }
  0x1e   : > { %v457_v9 = vld [vmem:[#allocation2] sm:$0x3f]  ;;  %v578_v11 = vrot.slane %v569_v8, %v380_v7  ;;  %v571_v14 = vcombine.high %v569_v8, %v569_v8 }
  0x1f   : > { %v513_v10 = vld [vmem:[#allocation2] sm:$0x3f]  ;;  %v466_v12 = vrot.slane %v457_v9, %v380_v7  ;;  %v459_v22 = vcombine.high %v457_v9, %v457_v9 }
  0x20   : > { %v485_v13 = vld [vmem:[#allocation2] sm:$0x3f]  ;;  %586 = vrot.lane.b32.xlu0 %v578_v11, %s1015_s14  ;;  %v522_v15 = vrot.slane %v513_v10, %v380_v7  ;;  %v585_v18 = vrot.slane %v571_v14, %v380_v7  ;;  %v515_v29 = vcombine.high %v513_v10, %v513_v10 }
  0x21   : > { %474 = vrot.lane.b32.xlu1 %v466_v12, %s1016_s15  ;;  %v501_v16 = vrot.slane %v485_v13, %v380_v7  ;;  %v541_v17 = vld [vmem:[#allocation2] sm:$0x3f]  ;;  %v487_v20 = vcombine.low %v485_v13, %v485_v13  ;;  %v473_v27 = vrot.slane %v459_v22, %v380_v7 }
  0x22   : > { %v557_v19 = vrot.slane %v541_v17, %v380_v7  ;;  %v372_v21 = vld [vmem:[#allocation2] sm:$0x3f]  ;;  %v543_v25 = vcombine.low %v541_v17, %v541_v17  ;;  %v529_v32 = vrot.slane %v515_v29, %v380_v7 }
  0x23   : > { %v494_v23 = vrot.slane %v487_v20, %v380_v7  ;;  %v388_v24 = vrot.slane %v372_v21, %v380_v7  ;;  %v894_v26 = vld.sshfl [vmem:[#allocation2] sm:$0x33 pattern:$0x76325410]  ;;  %v374_v30 = vcombine.low %v372_v21, %v372_v21 }
  0x24   : > { %530 = vrot.lane.b32.xlu0 %v522_v15, %s1017_s16  ;;  %371 = vst [vmem:[#allocation3 + $0x8] sm:$0x33] %v894_v26  ;;  %v550_v28 = vrot.slane %v543_v25, %v380_v7  ;;  %v401_v31 = vld [vmem:[#allocation2] sm:$0x3f] }
  0x25   : > { %504 = vrot.lane.b32.xlu1 %v501_v16, %s1018_s17  ;;  %v381_v33 = vrot.slane %v374_v30, %v380_v7  ;;  %v403_v34 = vcombine.high %v401_v31, %v401_v31  ;;  %v429_v35 = vld [vmem:[#allocation2] sm:$0x3f]  ;;  %v410_v37 = vrot.slane %v401_v31, %v380_v7 }
  0x26   : > { %v431_v38 = vcombine.low %v429_v35, %v429_v35  ;;  %v445_v39 = vrot.slane %v429_v35, %v380_v7  ;;  %v597_v35 = vld [vmem:[%s1156_s2] sm:$0xf] }
  0x27   : > { %v417_v36 = vrot.slane %v403_v34, %v380_v7 }
  0x28   : > { %588 = vrot.lane.b32.xlu0 %v585_v18, %s1015_s14  ;;  %v438_v40 = vrot.slane %v431_v38, %v380_v7  ;;  %v697_v38 = vsub.s32 1, %v1101_v6 }
  0x29   : > { %560 = vrot.lane.b32.xlu1 %v557_v19, %s1019_s18 }
  0x2c   : > { %502 = vrot.lane.b32.xlu0 %v494_v23, %s1018_s17  ;;  %s354_s17 = scalar_lea.vmem %s1159_s5, %s893_s19 }
  0x2d   : > { %391 = vrot.lane.b32.xlu1 %v388_v24, %s1020_s26 }
  0x30   : > { %558 = vrot.lane.b32.xlu0 %v550_v28, %s1019_s18 }
  0x31   : > { %476 = vrot.lane.b32.xlu1 %v473_v27, %s1016_s15  ;;  %s345_s15 = scalar_lea.vmem %s1158_s4, %s891_s12 }
  0x34   : > { %389 = vrot.lane.b32.xlu0 %v381_v33, %s1020_s26 }
  0x35   : > { %532 = vrot.lane.b32.xlu1 %v529_v32, %s1017_s16 }
  0x38   : > { %418 = vrot.lane.b32.xlu0 %v410_v37, %s1021_s27  ;;  %v689_v37 = vld [vmem:[%s335_s9] sm:$0x3] }
  0x39   : > { %420 = vrot.lane.b32.xlu1 %v417_v36, %s1021_s27  ;;  %v693_v36 = vsub.s32 0, %v1101_v6 }
  0x3c   : > { %446 = vrot.lane.b32.xlu0 %v438_v40, %s1022_s28  ;;  %v698_v40 = vrot.slane %v689_v37, %v697_v38 }
  0x3d   : > { %448 = vrot.lane.b32.xlu1 %v445_v39, %s1022_s28  ;;  %v694_v39 = vrot.slane %v689_v37, %v693_v36 }
  0x92   : > { %v587_v42 = vpop.permute.xlu0 %586 }
  0x93   : > { %v475_v43 = vpop.permute.xlu1 %474  ;;  %v590_v48 = vrot.slane %v587_v42, 4 }
  0x94   : > { %v478_v60 = vrot.slane %v475_v43, 4 }
  0x96   : > { %v531_v44 = vpop.permute.xlu0 %530 }
  0x97   : > { %v505_v45 = vpop.permute.xlu1 %504  ;;  %v534_v2 = vrot.slane %v531_v44, 4 }
  0x98   : > { %v507_v54 = vrot.slane %v505_v45, 4 }
  0x9a   : > { %v589_v46 = vpop.permute.xlu0 %588 }
  0x9b   : > { %v561_v47 = vpop.permute.xlu1 %560  ;;  %v591_v49 = vrot.slane %v589_v46, 4 }
  0x9c   : > { %v563_v61 = vrot.slane %v561_v47, 4 }
  0x9d   : > { %v592_v50 = vsel %vm395_vm1, %v590_v48, %v591_v49 }
  0x9e   : > { %v594_v51 = vsel %vm593_vm2, %v587_v42, %v592_v50  ;;  %v503_v52 = vpop.permute.xlu0 %502 }
  0x9f   : > { %v392_v53 = vpop.permute.xlu1 %391  ;;  %596 = vst [vmem:[#allocation3 + $0x18] sm:$0x33] %v594_v51  ;;  %v506_v55 = vrot.slane %v503_v52, 4 }
  0xa0   : > { %v394_v3 = vrot.slane %v392_v53, 4 }
  0xa1   : > { %v508_v56 = vsel %vm395_vm1, %v506_v55, %v507_v54 }
  0xa2   : > { %v510_v57 = vsel %vm509_vm3, %v503_v52, %v508_v56  ;;  %v559_v58 = vpop.permute.xlu0 %558 }
  0xa3   : > { %v477_v59 = vpop.permute.xlu1 %476  ;;  %512 = vst [vmem:[#allocation3 + $0x20] sm:$0xcc] %v510_v57  ;;  %v562_v62 = vrot.slane %v559_v58, 4 }
  0xa4   : > { %v479_v63 = vrot.slane %v477_v59, 4 }
  0xa5   : > { %v564_v0 = vsel %vm395_vm1, %v562_v62, %v563_v61 }
  0xa6   : > { %v480_v1 = vsel %vm395_vm1, %v478_v60, %v479_v63  ;;  %v566_v4 = vsel %vm565_vm4, %v559_v58, %v564_v0  ;;  %v390_v8 = vpop.permute.xlu0 %389  ;;  %v602_v9 = vld [vmem:[#allocation3 + $0x18] sm:$0x33] }
  0xa7   : > { %v482_v5 = vsel %vm481_vm5, %v475_v43, %v480_v1  ;;  %v533_v7 = vpop.permute.xlu1 %532  ;;  %568 = vst [vmem:[#allocation3 + $0x10] sm:$0xcc] %v566_v4  ;;  %v393_v11 = vrot.slane %v390_v8, 4  ;;  %v900_v12 = vcombine.high %v602_v9, %v602_v9  ;;  %v899_v13 = vcombine.low %v602_v9, %v602_v9 }
  0xa8   : > { %484 = vst [vmem:[#allocation3 + $0x20] sm:$0x33] %v482_v5  ;;  %v535_v10 = vrot.slane %v533_v7, 4 }
  0xa9   : > { %v396_v15 = vsel %vm395_vm1, %v393_v11, %v394_v3  ;;  %901 = vmatprep.subr.msk.bf16.mxu0 %vm632_vm8, %v900_v12  ;;  %v634_v16 = vsel %vm632_vm8, %v899_v13, 0 }
  0xaa   : > { %v536_v14 = vsel %vm395_vm1, %v534_v2, %v535_v10  ;;  %v398_v18 = vsel %vm397_vm7, %v390_v8, %v396_v15  ;;  %650 = vmatpush1.bf16.msra.mxu0 %v634_v16  ;;  %v419_v20 = vpop.permute.xlu0 %418 }
  0xab   : > { %v538_v17 = vsel %vm537_vm6, %v531_v44, %v536_v14  ;;  %v421_v19 = vpop.permute.xlu1 %420  ;;  %400 = vst [vmem:[#allocation3 + $0x8] sm:$0xcc] %v398_v18  ;;  %v422_v22 = vrot.slane %v419_v20, 4 }
  0xac   : > { %540 = vst [vmem:[#allocation3 + $0x10] sm:$0x33] %v538_v17  ;;  %v423_v21 = vrot.slane %v421_v19, 4 }
  0xae   : > { %v424_v23 = vsel %vm395_vm1, %v422_v22, %v423_v21  ;;  %v447_v26 = vpop.permute.xlu0 %446 }
  0xaf   : > { %v426_v24 = vsel %vm425_vm9, %v419_v20, %v424_v23  ;;  %v449_v25 = vpop.permute.xlu1 %448  ;;  %v450_v28 = vrot.slane %v447_v26, 4 }
  0xb0   : > { %428 = vst [vmem:[#allocation3] sm:$0x33] %v426_v24  ;;  %v451_v27 = vrot.slane %v449_v25, 4 }
  0xb2   : > { %v452_v29 = vsel %vm395_vm1, %v450_v28, %v451_v27 }
  0xb3   : > { %v454_v30 = vsel %vm453_vm10, %v447_v26, %v452_v29  ;;  %v968_v31 = vld [vmem:[#allocation3 + $0x24] ss:$-16 sps:$4 sm:$0xff]   ;;  %v970_v32 = vld [vmem:[#allocation3 + $0x20] ss:$-16 sps:$4 sm:$0xff]  }
  0xb4   : > { %456 = vst [vmem:[#allocation3] sm:$0xcc] %v454_v30  ;;  %651 = vmatprep.subr.bf16.mxu0 %v968_v31 }
  0xb5   : > { %652 = vmatpush1.bf16.msra.mxu0 %v970_v32 }
  0xbb   : > { %v971_v33 = vld [vmem:[#allocation3 + $0xc] ss:$-8 sps:$4 sm:$0xff]   ;;  %v973_v34 = vld [vmem:[#allocation3 + $0x8] ss:$-8 sps:$4 sm:$0xff]  }
  0xbc   : > { %653 = vmatprep.subr.bf16.mxu0 %v971_v33 }
  0xbd   : > { %654 = vmatpush1.bf16.msra.mxu0 %v973_v34 }
  0xc0   : > { %902 = vmatmul.mubr.msk.bf16.vlgmr.msra.gmra.mxu0 %vm628_vm11, %v597_v35 }
 0x180   : > { %v673_v41 = vpop.f32.mrf.mxu0 }
 0x181   : > { %v701_v42 = vmul.f32 %v694_v39, %v673_v41 }
 0x182   : > { %v675_v43 = vpop.f32.mrf.mxu0 }
 0x183   : > { %v906_v44 = vpack.c.bf16 %v675_v43, %v673_v41  ;;  %v702_v45 = vmul.f32 %v698_v40, %v675_v43  ;;  %v708_v48 = vmul.f32 %v701_v42, %v673_v41 }
 0x184   : > { %v677_v46 = vpop.f32.mrf.mxu0 }
 0x185   : > { %688 = vst [vmem:[%s345_s15] sm:$0xff] %v906_v44  ;;  %v703_v47 = vadd.f32 %v702_v45, %v701_v42  ;;  %v709_v49 = vmul.f32 %v702_v45, %v675_v43 }
 0x186   : > { %v678_v6 = vpop.f32.mrf.mxu0 }
 0x187   : > { %704 = vadd.xlane.f32.xlu0 %v703_v47  ;;  %v710_v50 = vadd.f32 %v709_v49, %v708_v48 }
 0x189   : > { %711 = vadd.xlane.f32.xlu1 %v710_v50 }
 0x210   : > { %v705_v51 = vpop.xlane.xlu0 %704 }
 0x211   : > { %707 = vst.msk [vmem:[%s354_s17] sm:$0xff] %vm706_vm12, %v705_v51 }
 0x212   : > { %v712_v52 = vpop.xlane.xlu1 %711 }
 0x213   : > { %714 = vst.msk [vmem:[%s354_s17] sm:$0xff] %vm713_vm13, %v712_v52 }
 0x214 PF: > { %s16_s22 = sadd.s32 1, %s1012_s22   ;;  %s1160_s18 = smov %s1004_s20 }
 0x215   : > { %p13_p9 = scmp.ge.s32.totalorder %s16_s22, 6   ;;  %s1161_s19 = smov %s1008_s21 }
 0x216   : > { %s1162_s20 = smov %s1165_s23  ;;  %s1163_s21 = smov %s1169_s24 }
 0x217   :  { %15 = sbr.rel (!%p13_p9) target bundleno = 3 (0x3), region = 84 }

</bundles_post_ra>
